<compile_context>
chip_gen: v7x
topology: tpu7x:2x2x1
jax: 0.10.0
libtpu: 0.0.40
codegen_flags: <defaults>
</compile_context>

<pallas_src>
import functools

import jax
import jax.numpy as jnp
from jax.experimental import pallas as pl
from jax.experimental.pallas import tpu as pltpu

IN_FEATURES = 3 * 7 * 7       # 147
N_CLASSES = 21
N_BBOX = 21 * 4               # 84
OUT_FEATURES = N_CLASSES + N_BBOX   # 105
OUT_PADDED = 128              # lane-dense padded fused output width
MAX_TILE_N = 512              # rows per grid step for large proposal batches


def _round_up(x, m):
    return (x + m - 1) // m * m


def _classifier_kernel(x_ref, w_ref, b_ref, o_ref):
    # One fused MXU pass: [TILE_N, 147] @ [147, 128] + [1, 128]  (f32 accumulate)
    o_ref[...] = (
        jnp.dot(x_ref[...], w_ref[...], preferred_element_type=jnp.float32)
        + b_ref[...]
    ).astype(o_ref.dtype)


@functools.partial(jax.jit, static_argnames=())
def classifier_forward(x, w1, b1, w2, b2):
    """x: [N, 147]; w1: [21, 147]; b1: [1, 21]; w2: [84, 147]; b2: [1, 84]."""
    n = x.shape[0]

    # Pre-transpose + fuse weights/biases in the wrapper (plain XLA ops).
    w_fused = jnp.concatenate([w1.T, w2.T], axis=1)            # [147, 105]
    b_fused = jnp.concatenate([b1, b2], axis=1)                # [1, 105]
    w_fused = jnp.pad(w_fused, ((0, 0), (0, OUT_PADDED - OUT_FEATURES)))
    b_fused = jnp.pad(b_fused, ((0, 0), (0, OUT_PADDED - OUT_FEATURES)))

    # Row tiling: small batches become one (8-aligned) block, large batches
    # get a pipelined grid with MAX_TILE_N rows per step.
    tile_n = min(MAX_TILE_N, _round_up(n, 8))
    n_pad = _round_up(n, tile_n)
    if n_pad != n:
        x = jnp.pad(x, ((0, n_pad - n), (0, 0)))

    out = pl.pallas_call(
        _classifier_kernel,
        out_shape=jax.ShapeDtypeStruct((n_pad, OUT_PADDED), jnp.float32),
        grid=(n_pad // tile_n,),
        in_specs=[
            pl.BlockSpec((tile_n, IN_FEATURES), lambda i: (i, 0)),   # x tile
            pl.BlockSpec((IN_FEATURES, OUT_PADDED), lambda i: (0, 0)),  # weights resident
            pl.BlockSpec((1, OUT_PADDED), lambda i: (0, 0)),            # bias resident
        ],
        out_specs=pl.BlockSpec((tile_n, OUT_PADDED), lambda i: (i, 0)),
        compiler_params=pltpu.CompilerParams(
            dimension_semantics=("parallel",),
        ),
    )(x, w_fused, b_fused)

    out = out[:n]
    return out[:, :N_CLASSES], out[:, N_CLASSES:OUT_FEATURES]


def init_params(key):
    # Deterministic init mimicking nn.Linear default: U(-1/sqrt(fan_in), +)
    k1, k2, k3, k4 = jax.random.split(key, 4)
    bound = 1.0 / jnp.sqrt(jnp.float32(IN_FEATURES))
    w1 = jax.random.uniform(k1, (N_CLASSES, IN_FEATURES), jnp.float32, -bound, bound)
    b1 = jax.random.uniform(k2, (1, N_CLASSES), jnp.float32, -bound, bound)
    w2 = jax.random.uniform(k3, (N_BBOX, IN_FEATURES), jnp.float32, -bound, bound)
    b2 = jax.random.uniform(k4, (1, N_BBOX), jnp.float32, -bound, bound)
    return w1, b1, w2, b2


if __name__ == "__main__":
    key = jax.random.PRNGKey(0)
    kx, kx2, kp = jax.random.split(key, 3)
    w1, b1, w2, b2 = init_params(kp)

    # Small batch (single-block path).
    batch = 8
    x = jax.random.normal(kx, (batch, IN_FEATURES), jnp.float32)
    cls_scores, bbox_deltas = classifier_forward(x, w1, b1, w2, b2)
    jax.block_until_ready((cls_scores, bbox_deltas))

    ref1 = x @ w1.T + b1
    ref2 = x @ w2.T + b2
    assert cls_scores.shape == (batch, N_CLASSES)
    assert bbox_deltas.shape == (batch, N_BBOX)
    assert jnp.allclose(cls_scores, ref1, atol=1e-5, rtol=1e-5)
    assert jnp.allclose(bbox_deltas, ref2, atol=1e-5, rtol=1e-5)

    # Larger batch exercising the row-grid + padding path.
    batch2 = 600
    x2 = jax.random.normal(kx2, (batch2, IN_FEATURES), jnp.float32)
    cls2, bbox2 = classifier_forward(x2, w1, b1, w2, b2)
    jax.block_until_ready((cls2, bbox2))
    assert cls2.shape == (batch2, N_CLASSES)
    assert bbox2.shape == (batch2, N_BBOX)
    assert jnp.allclose(cls2, x2 @ w1.T + b1, atol=1e-5, rtol=1e-5)
    assert jnp.allclose(bbox2, x2 @ w2.T + b2, atol=1e-5, rtol=1e-5)

    print("KERNEL_OK")
</pallas_src>

<mosaic_0001>
module attributes {stable_mosaic.version = 11 : i64} {
  func.func @_classifier_kernel(%arg0: i32, %arg1: memref<8x147xf32, #tpu.memory_space<vmem>>, %arg2: memref<147x128xf32, #tpu.memory_space<vmem>>, %arg3: memref<1x128xf32, #tpu.memory_space<vmem>>, %arg4: memref<8x128xf32, #tpu.memory_space<vmem>>) attributes {dimension_semantics = [#tpu.dimension_semantics<parallel>], iteration_bounds = array<i64: 1>, scalar_prefetch = 0 : i64, scratch_operands = 0 : i64, tpu.core_type = #tpu.core_type<tc>, window_params = [{transform_indices = @transform_0, window_bounds = array<i64: 8, 147>}, {pipeline_mode = #tpu.pipeline_mode<synchronous>, transform_indices = @transform_1, window_bounds = array<i64: 147, 128>}, {pipeline_mode = #tpu.pipeline_mode<synchronous>, transform_indices = @transform_2, window_bounds = array<i64: 1, 128>}, {transform_indices = @transform_3, window_bounds = array<i64: 8, 128>}]} {
    %c0 = arith.constant 0 : index
    %c0_0 = arith.constant 0 : index
    %0 = vector.load %arg1[%c0, %c0_0] : memref<8x147xf32, #tpu.memory_space<vmem>>, vector<8x147xf32>
    %c0_1 = arith.constant 0 : index
    %c0_2 = arith.constant 0 : index
    %1 = vector.load %arg2[%c0_1, %c0_2] : memref<147x128xf32, #tpu.memory_space<vmem>>, vector<147x128xf32>
    %cst = arith.constant dense<0.000000e+00> : vector<8x128xf32>
    %2 = tpu.matmul %0, %1, %cst {dimension_numbers = #tpu.dot_dimension_numbers<[1], [0], [0], [1], [0, 0, 1, 1], [], []>} : vector<8x147xf32>, vector<147x128xf32>, vector<8x128xf32> -> vector<8x128xf32>
    %c0_3 = arith.constant 0 : index
    %c0_4 = arith.constant 0 : index
    %3 = vector.load %arg3[%c0_3, %c0_4] : memref<1x128xf32, #tpu.memory_space<vmem>>, vector<1x128xf32>
    %4 = vector.broadcast %3 : vector<1x128xf32> to vector<8x128xf32>
    %5 = arith.addf %2, %4 : vector<8x128xf32>
    %c0_5 = arith.constant 0 : index
    %c0_6 = arith.constant 0 : index
    %6 = vector.load %arg4[%c0_5, %c0_6] : memref<8x128xf32, #tpu.memory_space<vmem>>, vector<8x128xf32>
    tpu.vector_store %arg4[%c0_5, %c0_6], %5 {strides = array<i32>} : memref<8x128xf32, #tpu.memory_space<vmem>>, vector<8x128xf32>,
    return
  }
  func.func @transform_0(%arg0: i32) -> (i32, i32) {
    %c0_i32 = arith.constant 0 : i32
    %c0_i32_0 = arith.constant 0 : i32
    return %arg0, %c0_i32 : i32, i32
  }
  func.func @transform_1(%arg0: i32) -> (i32, i32) {
    %c0_i32 = arith.constant 0 : i32
    %c0_i32_0 = arith.constant 0 : i32
    %c0_i32_1 = arith.constant 0 : i32
    return %c0_i32, %c0_i32_0 : i32, i32
  }
  func.func @transform_2(%arg0: i32) -> (i32, i32) {
    %c0_i32 = arith.constant 0 : i32
    %c0_i32_0 = arith.constant 0 : i32
    %c0_i32_1 = arith.constant 0 : i32
    return %c0_i32, %c0_i32_0 : i32, i32
  }
  func.func @transform_3(%arg0: i32) -> (i32, i32) {
    %c0_i32 = arith.constant 0 : i32
    %c0_i32_0 = arith.constant 0 : i32
    return %arg0, %c0_i32 : i32, i32
  }
}

</mosaic_0001>

<bundles_post_ra>
// kernel: classifier_forward.1
= control target key start
LH: loop header
LB: loop body
LE: loop exit
PB: predicated region body
PF: predicated region fallthrough
CT: control target
= control target key end

     0   :  { %v157_v0 = vmov 0.0|0.0   ;;  %vm42_vm0 = vcmask 154624   ;;  %v158_v29 = vmov 0.0   ;;  %vm46_vm1 = vcmask 1042432   ;;  %s248_s1 = inlined_call_operand.vmem [shape: f32[147,128], index: 1, kind: input, shape index: {}]   ;;  %s249_s0 = inlined_call_operand.vmem [shape: f32[8,147], index: 0, kind: input, shape index: {}]   ;;  %s250_s2 = inlined_call_operand.vmem [shape: f32[1,128], index: 2, kind: input, shape index: {}]   ;;  %s251_s3 = inlined_call_operand.vmem [shape: f32[8,128], index: 3, kind: output, shape index: {}]  }
   0x1   :  { %128 = vmatprep.subr.bf16.mxu0 %v157_v0  ;;  %v16_v1 = vld [vmem:[%s248_s1] sm:$0xff]  ;;  %v17_v2 = vld [vmem:[%s248_s1 + $0x8] sm:$0xff]  ;;  %v18_v3 = vld [vmem:[%s248_s1 + $0x10] sm:$0xff] }
   0x2   :  { %v129_v4 = vpack.c.bf16 %v17_v2, %v16_v1  ;;  %v19_v5 = vld [vmem:[%s248_s1 + $0x18] sm:$0xff]  ;;  %v20_v7 = vld [vmem:[%s248_s1 + $0x20] sm:$0xff]  ;;  %v21_v8 = vld [vmem:[%s248_s1 + $0x28] sm:$0xff] }
   0x3   :  { %v132_v6 = vpack.c.bf16 %v19_v5, %v18_v3  ;;  %v15_v9 = vld [vmem:[%s249_s0 + $0x8] sm:$0xff]  ;;  %v135_v10 = vpack.c.bf16 %v21_v8, %v20_v7  ;;  %v22_v11 = vld [vmem:[%s248_s1 + $0x30] sm:$0xff]  ;;  %v23_v12 = vld [vmem:[%s248_s1 + $0x38] sm:$0xff] }
   0x4   :  { %130 = vmatpush1.bf16.msra.mxu0 %v129_v4  ;;  %127 = vmatprep.mubr.msk.f32.mxu0 %vm42_vm0, %v15_v9  ;;  %v138_v13 = vpack.c.bf16 %v23_v12, %v22_v11  ;;  %v24_v14 = vld [vmem:[%s248_s1 + $0x40] sm:$0xff]  ;;  %v25_v15 = vld [vmem:[%s248_s1 + $0x48] sm:$0xff]  ;;  %v26_v17 = vld [vmem:[%s248_s1 + $0x50] sm:$0xff] }
   0x5   :  { %131 = vmatprep.subr.bf16.mxu0 %v157_v0  ;;  %v141_v16 = vpack.c.bf16 %v25_v15, %v24_v14  ;;  %v27_v18 = vld [vmem:[%s248_s1 + $0x58] sm:$0xff]  ;;  %v28_v20 = vld [vmem:[%s248_s1 + $0x60] sm:$0xff]  ;;  %v29_v21 = vld [vmem:[%s248_s1 + $0x68] sm:$0xff] }
   0x6   :  { %v144_v19 = vpack.c.bf16 %v27_v18, %v26_v17  ;;  %v147_v22 = vpack.c.bf16 %v29_v21, %v28_v20  ;;  %v30_v23 = vld [vmem:[%s248_s1 + $0x70] sm:$0xff]  ;;  %v31_v24 = vld [vmem:[%s248_s1 + $0x78] sm:$0xff]  ;;  %v32_v26 = vld [vmem:[%s248_s1 + $0x80] sm:$0xff] }
   0x7   :  { %v150_v25 = vpack.c.bf16 %v31_v24, %v30_v23  ;;  %v33_v27 = vld [vmem:[%s248_s1 + $0x88] sm:$0xff]  ;;  %v34_v30 = vld [vmem:[%s248_s1 + $0x90] sm:$0x7]  ;;  %v14_v31 = vld [vmem:[%s249_s0] sm:$0xff] }
   0x8   :  { %133 = vmatpush1.bf16.msra.mxu0 %v132_v6  ;;  %v153_v28 = vpack.c.bf16 %v33_v27, %v32_v26  ;;  %v125_v32 = vld [vmem:[%s250_s2] ss:$0 sm:$0xff] }
   0x9   :  { %134 = vmatprep.subr.bf16.mxu0 %v157_v0 }
   0xc   :  { %136 = vmatpush1.bf16.msra.mxu0 %v135_v10 }
   0xd   :  { %137 = vmatprep.subr.bf16.mxu0 %v157_v0 }
  0x10   :  { %139 = vmatpush1.bf16.msra.mxu0 %v138_v13 }
  0x11   :  { %140 = vmatprep.subr.bf16.mxu0 %v157_v0 }
  0x14   :  { %142 = vmatpush1.bf16.msra.mxu0 %v141_v16 }
  0x15   :  { %143 = vmatprep.subr.bf16.mxu0 %v157_v0 }
  0x18   :  { %145 = vmatpush1.bf16.msra.mxu0 %v144_v19 }
  0x19   :  { %146 = vmatprep.subr.bf16.mxu0 %v157_v0 }
  0x1c   :  { %148 = vmatpush1.bf16.msra.mxu0 %v147_v22 }
  0x1d   :  { %149 = vmatprep.subr.bf16.mxu0 %v157_v0 }
  0x20   :  { %151 = vmatpush1.bf16.msra.mxu0 %v150_v25 }
  0x21   :  { %152 = vmatprep.subr.bf16.mxu0 %v157_v0 }
  0x24   :  { %154 = vmatpush1.bf16.msra.mxu0 %v153_v28 }
  0x25   :  { %86 = vmatprep.subr.mxu0 %v158_v29 }
  0x28   :  { %126 = vmatpush1.msk.msra.mxu0 %vm46_vm1, %v34_v30 }
  0x29   :  { %115 = vmatmul.mubr.f32.vlgmr.msra.gmra.mrb[0].mxu0 %v14_v31 }
  0xfc   :  { %v116_v33 = vpop.f32.mrb[0].mxu0 }
  0xfd   :  { %v117_v34 = vadd.f32 %v125_v32, %v116_v33  ;;  %v118_v35 = vpop.f32.mrb[1].mxu0 }
  0xff   :  { %120 = vst [vmem:[%s251_s3] sm:$0xff] %v117_v34 }

</bundles_post_ra>
